<compile_context>
chip_gen: v6e
topology: v6e:2x2x1
jax: 0.10.0
libtpu: 0.0.40
codegen_flags: <defaults>
</compile_context>

<pallas_src>
import functools
import math

import jax
import jax.numpy as jnp
from jax.experimental import pallas as pl
from jax.experimental.pallas import tpu as pltpu


_VMEM_LIMIT = 64 * 1024 * 1024  # explicit scoped-VMEM cap (safe on v5e/v6e/v7x)


def _pick_tile(dim, preferred, align):
    """Largest `align`-multiple tile <= preferred that divides dim, else full dim."""
    if dim <= preferred:
        return dim
    t = preferred - (preferred % align)
    while t >= align:
        if dim % t == 0:
            return t
        t -= align
    return dim


# ----------------------------------------------------------------------------
# Tiled linear kernel: y = x @ W_t + b
#   x, W_t are bf16 in HBM; accumulation is f32 in a resident VMEM scratch.
# ----------------------------------------------------------------------------
def _matmul_kernel(x_ref, w_ref, b_ref, o_ref, acc_ref):
    k = pl.program_id(2)

    @pl.when(k == 0)
    def _init():
        acc_ref[...] = jnp.zeros_like(acc_ref)

    acc_ref[...] += jnp.dot(x_ref[...], w_ref[...],
                            preferred_element_type=jnp.float32)

    @pl.when(k == pl.num_programs(2) - 1)
    def _finalize():
        o_ref[...] = (acc_ref[...] + b_ref[...]).astype(o_ref.dtype)


def pallas_matmul(x, w_t, bias, *, out_dtype=jnp.bfloat16, tm=256, tn=512, tk=512):
    m, kdim = x.shape
    _, n = w_t.shape
    tm = _pick_tile(m, tm, 8)
    tn = _pick_tile(n, tn, 128)
    tk = _pick_tile(kdim, tk, 128)
    grid = (m // tm, n // tn, kdim // tk)
    out_bytes = jnp.dtype(out_dtype).itemsize
    cost = pl.CostEstimate(
        flops=2 * m * n * kdim,
        transcendentals=0,
        bytes_accessed=(m * kdim * x.dtype.itemsize
                        + kdim * n * w_t.dtype.itemsize
                        + m * n * out_bytes + n * 4),
    )
    return pl.pallas_call(
        _matmul_kernel,
        out_shape=jax.ShapeDtypeStruct((m, n), out_dtype),
        grid=grid,
        in_specs=[
            pl.BlockSpec((tm, tk), lambda i, j, k: (i, k)),
            pl.BlockSpec((tk, tn), lambda i, j, k: (k, j)),
            pl.BlockSpec((1, tn), lambda i, j, k: (0, j)),
        ],
        out_specs=pl.BlockSpec((tm, tn), lambda i, j, k: (i, j)),
        scratch_shapes=[pltpu.VMEM((tm, tn), jnp.float32)],
        compiler_params=pltpu.CompilerParams(
            dimension_semantics=("parallel", "parallel", "arbitrary"),
            vmem_limit_bytes=_VMEM_LIMIT),
        cost_estimate=cost,
    )(x, w_t, bias.reshape(1, n).astype(jnp.float32))


# ----------------------------------------------------------------------------
# Attention kernel.
#   grid = (B, Lq // tq); each step handles all heads of one batch's q-tile.
#   Blocks are lane-dense (tq, E) / (Lk, E); per-head operands are static lane
#   slices, k^T is folded into dot_general, so there are no in-kernel transposes.
# ----------------------------------------------------------------------------
def _attn_kernel(q_ref, k_ref, v_ref, o_ref, *w_refs, num_heads, head_dim, scale,
                 need_weights):
    outs = []
    w_acc = None
    for h in range(num_heads):          # unrolled per-head loop (static lane slices)
        lo = h * head_dim
        hi = lo + head_dim
        qh = q_ref[:, lo:hi]            # (tq, dh) bf16
        kh = k_ref[:, lo:hi]            # (lk, dh) bf16
        vh = v_ref[:, lo:hi]            # (lk, dh) bf16

        # scores: q_h @ k_h^T, f32 accumulation; 1/sqrt(dh) applied in f32.
        s = jax.lax.dot_general(qh, kh, (((1,), (1,)), ((), ())),
                                preferred_element_type=jnp.float32) * scale  # (tq, lk)

        # Numerically-stable softmax in f32.  The reciprocal is exact and only
        # over tq elements, so probability rows sum to 1 for the weights output.
        mx = jnp.max(s, axis=-1, keepdims=True)
        p = jnp.exp(s - mx)
        denom = jnp.sum(p, axis=-1, keepdims=True)
        w = p * (1.0 / denom)                                               # (tq, lk)

        o_h = jnp.dot(w.astype(jnp.bfloat16), vh,
                      preferred_element_type=jnp.float32)                   # (tq, dh)
        outs.append(o_h)
        if need_weights:
            w_acc = w if w_acc is None else w_acc + w

    # Single lane-dense full-block store of the (tq, E) output.
    o_ref[...] = jnp.concatenate(outs, axis=-1).astype(o_ref.dtype)
    if need_weights:
        w_refs[0][...] = (w_acc * (1.0 / num_heads)).astype(w_refs[0].dtype)


def pallas_attention(q, k, v, *, num_heads, need_weights=True, tq=256):
    b, lq, e = q.shape
    lk = k.shape[1]
    dh = e // num_heads
    tq = _pick_tile(lq, tq, 8)
    n_q = lq // tq

    kern = functools.partial(_attn_kernel, num_heads=num_heads, head_dim=dh,
                             scale=1.0 / math.sqrt(dh), need_weights=need_weights)

    in_specs = [
        pl.BlockSpec((None, tq, e), lambda bi, qi: (bi, qi, 0)),
        pl.BlockSpec((None, lk, e), lambda bi, qi: (bi, 0, 0)),
        pl.BlockSpec((None, lk, e), lambda bi, qi: (bi, 0, 0)),
    ]
    flops = 4 * b * lq * lk * e            # scores + attn@v, all heads
    trans = b * num_heads * lq * lk        # exp
    bytes_accessed = (b * lq * e * 2 + 2 * b * lk * e * 2 + b * lq * e * 2)
    if need_weights:
        bytes_accessed += b * lq * lk * 4
        out_shape = (jax.ShapeDtypeStruct((b, lq, e), jnp.bfloat16),
                     jax.ShapeDtypeStruct((b, lq, lk), jnp.float32))
        out_specs = (pl.BlockSpec((None, tq, e), lambda bi, qi: (bi, qi, 0)),
                     pl.BlockSpec((None, tq, lk), lambda bi, qi: (bi, qi, 0)))
    else:
        out_shape = jax.ShapeDtypeStruct((b, lq, e), jnp.bfloat16)
        out_specs = pl.BlockSpec((None, tq, e), lambda bi, qi: (bi, qi, 0))

    res = pl.pallas_call(
        kern,
        out_shape=out_shape,
        grid=(b, n_q),
        in_specs=in_specs,
        out_specs=out_specs,
        compiler_params=pltpu.CompilerParams(
            dimension_semantics=("parallel", "parallel"),
            vmem_limit_bytes=_VMEM_LIMIT),
        cost_estimate=pl.CostEstimate(flops=flops, transcendentals=trans,
                                      bytes_accessed=bytes_accessed),
    )(q, k, v)
    if need_weights:
        return res[0], res[1]
    return res, None


# ----------------------------------------------------------------------------
# Module wrapper with deterministic parameter init (matches torch defaults)
# ----------------------------------------------------------------------------
class ContentMultiheadAttentionPallas:
    def __init__(self, embed_dim, num_heads, bias=True, batch_first=False, key=None):
        assert embed_dim % num_heads == 0
        self.embed_dim = embed_dim
        self.num_heads = num_heads
        self.head_dim = embed_dim // num_heads
        self.batch_first = batch_first

        k_in, k_out = jax.random.split(key)
        # xavier_uniform_ for in_proj_weight (3E, E)
        limit = math.sqrt(6.0 / (3 * embed_dim + embed_dim))
        self.in_proj_weight = jax.random.uniform(
            k_in, (3 * embed_dim, embed_dim), minval=-limit, maxval=limit,
            dtype=jnp.float32)
        self.in_proj_bias = jnp.zeros((3 * embed_dim,), jnp.float32)  # constant_(0)
        # out_proj: torch Linear default init (uniform with bound 1/sqrt(fan_in))
        bound = 1.0 / math.sqrt(embed_dim)
        self.out_proj_weight = jax.random.uniform(
            k_out, (embed_dim, embed_dim), minval=-bound, maxval=bound,
            dtype=jnp.float32)
        self.out_proj_bias = jnp.zeros((embed_dim,), jnp.float32)     # constant_(0)

        # Pre-transposed bf16 copies used by the kernels (halves weight HBM traffic;
        # f32 masters kept for reference / export).
        self.in_proj_weight_t = jnp.transpose(self.in_proj_weight).astype(jnp.bfloat16)
        self.out_proj_weight_t = jnp.transpose(self.out_proj_weight).astype(jnp.bfloat16)

    # Packed in-projection (fused single matmul for self-attention, activations
    # read from HBM once with tn = full 3E).
    def _in_projection(self, qb, kb, vb):
        e = self.embed_dim
        w_t = self.in_proj_weight_t
        bias = self.in_proj_bias
        if (qb is kb) and (kb is vb):
            b, l, _ = qb.shape
            qkv = pallas_matmul(qb.reshape(b * l, e), w_t, bias, tn=3 * e)
            q = qkv[:, :e].reshape(b, l, e)
            k = qkv[:, e:2 * e].reshape(b, l, e)
            v = qkv[:, 2 * e:].reshape(b, l, e)
            return q, k, v
        if kb is vb:
            b, l, _ = qb.shape
            bk, lk, _ = kb.shape
            q = pallas_matmul(qb.reshape(b * l, e), w_t[:, :e], bias[:e]
                              ).reshape(b, l, e)
            kv = pallas_matmul(kb.reshape(bk * lk, e), w_t[:, e:], bias[e:], tn=2 * e)
            k = kv[:, :e].reshape(bk, lk, e)
            v = kv[:, e:].reshape(bk, lk, e)
            return q, k, v
        q = pallas_matmul(qb.reshape(-1, e), w_t[:, :e], bias[:e]).reshape(qb.shape)
        k = pallas_matmul(kb.reshape(-1, e), w_t[:, e:2 * e], bias[e:2 * e]
                          ).reshape(kb.shape)
        v = pallas_matmul(vb.reshape(-1, e), w_t[:, 2 * e:], bias[2 * e:]
                          ).reshape(vb.shape)
        return q, k, v

    def __call__(self, query, key, value, need_weights=True):
        # Internal layout is batch-major (B, L, E) bf16 so every kernel block is
        # lane-dense; the only relayouts are these two tiny boundary transposes.
        if (query is key) and (key is value):
            x = query if self.batch_first else jnp.swapaxes(query, 0, 1)
            x = x.astype(jnp.bfloat16)
            qb = kb = vb = x
        else:
            def _prep(t):
                t = t if self.batch_first else jnp.swapaxes(t, 0, 1)
                return t.astype(jnp.bfloat16)
            qb, kb, vb = _prep(query), _prep(key), _prep(value)

        b, lq, e = qb.shape

        q, k, v = self._in_projection(qb, kb, vb)
        out, weights = pallas_attention(q, k, v, num_heads=self.num_heads,
                                        need_weights=need_weights)

        attn_out = pallas_matmul(out.reshape(b * lq, e), self.out_proj_weight_t,
                                 self.out_proj_bias, out_dtype=jnp.float32
                                 ).reshape(b, lq, e)
        if not self.batch_first:
            attn_out = jnp.swapaxes(attn_out, 0, 1)   # back to (L, B, E)
        return attn_out, weights


# ----------------------------------------------------------------------------
# Pure-JAX f32 reference (torch multi_head_attention_forward semantics)
# ----------------------------------------------------------------------------
def _reference_forward(mha, query, key, value):
    e = mha.embed_dim
    h, dh = mha.num_heads, mha.head_dim
    w_in, b_in = mha.in_proj_weight, mha.in_proj_bias
    l, b, _ = query.shape
    lk = key.shape[0]
    q = query @ w_in[:e].T + b_in[:e]
    k = key @ w_in[e:2 * e].T + b_in[e:2 * e]
    v = value @ w_in[2 * e:].T + b_in[2 * e:]
    qh = jnp.transpose(q.reshape(l, b * h, dh), (1, 0, 2))
    kh = jnp.transpose(k.reshape(lk, b * h, dh), (1, 0, 2))
    vh = jnp.transpose(v.reshape(lk, b * h, dh), (1, 0, 2))
    s = (qh / math.sqrt(dh)) @ jnp.transpose(kh, (0, 2, 1))
    w = jax.nn.softmax(s, axis=-1)
    o = w @ vh                                                   # (B*H, L, Dh)
    o = jnp.transpose(o, (1, 0, 2)).reshape(l * b, e)
    out = (o @ mha.out_proj_weight.T + mha.out_proj_bias).reshape(l, b, e)
    return out, w.reshape(b, h, l, lk).mean(axis=1)


if __name__ == "__main__":
    root = jax.random.PRNGKey(0)
    kx, kp = jax.random.split(root)

    L, B, E, H = 8, 2, 32, 4   # seq=8, batch=2, embed=32, heads=4 (head_dim=8)
    x = jax.random.normal(kx, (L, B, E), dtype=jnp.float32)

    mha = ContentMultiheadAttentionPallas(E, H, key=kp)
    # self-attention (query is key is value) -> exercises the fused QKV matmul
    attn_output, attn_weights = mha(x, x, x)
    jax.block_until_ready((attn_output, attn_weights))

    assert attn_output.shape == (L, B, E)
    assert attn_weights.shape == (B, L, L)
    assert bool(jnp.all(jnp.isfinite(attn_output)))
    assert bool(jnp.all(jnp.isfinite(attn_weights)))
    # softmax rows sum to 1 (exact reciprocal on the weights path)
    assert bool(jnp.allclose(jnp.sum(attn_weights, axis=-1), 1.0, atol=5e-3))

    # compare against a pure-JAX f32 reference (loose tolerance: bf16 HBM boundaries)
    ref_out, ref_w = _reference_forward(mha, x, x, x)
    assert bool(jnp.allclose(attn_output, ref_out, atol=7.5e-2, rtol=7.5e-2))
    assert bool(jnp.allclose(attn_weights, ref_w, atol=2e-2, rtol=5e-2))

    # need_weights=False path (gated weights output) must match the output path
    out_nw, w_nw = mha(x, x, x, need_weights=False)
    jax.block_until_ready(out_nw)
    assert w_nw is None
    assert bool(jnp.allclose(out_nw, attn_output, atol=1e-5))

    print("KERNEL_OK")
</pallas_src>

<mosaic_0001>
module attributes {stable_mosaic.version = 11 : i64} {
  func.func @_matmul_kernel(%arg0: i32, %arg1: i32, %arg2: i32, %arg3: memref<16x32xbf16, #tpu.memory_space<vmem>>, %arg4: memref<32x96xbf16, #tpu.memory_space<vmem>>, %arg5: memref<1x96xf32, #tpu.memory_space<vmem>>, %arg6: memref<16x96xbf16, #tpu.memory_space<vmem>>, %arg7: memref<16x96xf32, #tpu.memory_space<vmem>>) attributes {dimension_semantics = [#tpu.dimension_semantics<parallel>, #tpu.dimension_semantics<parallel>, #tpu.dimension_semantics<arbitrary>], iteration_bounds = array<i64: 1, 1, 1>, scalar_prefetch = 0 : i64, scratch_operands = 1 : i64, tpu.core_type = #tpu.core_type<tc>, window_params = [{transform_indices = @transform_0, window_bounds = array<i64: 16, 32>}, {transform_indices = @transform_1, window_bounds = array<i64: 32, 96>}, {transform_indices = @transform_2, window_bounds = array<i64: 1, 96>}, {transform_indices = @transform_3, window_bounds = array<i64: 16, 96>}]} {
    %c0_i32 = arith.constant 0 : i32
    %0 = arith.cmpi eq, %arg2, %c0_i32 : i32
    %1 = arith.extui %0 : i1 to i32
    %c0_i32_0 = arith.constant 0 : i32
    %2 = arith.cmpi ne, %1, %c0_i32_0 : i32
    scf.if %2 {
      %cst_10 = arith.constant 0.000000e+00 : f32
      %12 = vector.broadcast %cst_10 : f32 to vector<16x96xf32>
      %c0_11 = arith.constant 0 : index
      %c0_12 = arith.constant 0 : index
      %13 = vector.load %arg7[%c0_11, %c0_12] : memref<16x96xf32, #tpu.memory_space<vmem>>, vector<16x96xf32>
      tpu.vector_store %arg7[%c0_11, %c0_12], %12 {strides = array<i32>} : memref<16x96xf32, #tpu.memory_space<vmem>>, vector<16x96xf32>,
    } else {
    }
    %c0 = arith.constant 0 : index
    %c0_1 = arith.constant 0 : index
    %3 = vector.load %arg7[%c0, %c0_1] : memref<16x96xf32, #tpu.memory_space<vmem>>, vector<16x96xf32>
    %c0_2 = arith.constant 0 : index
    %c0_3 = arith.constant 0 : index
    %4 = vector.load %arg3[%c0_2, %c0_3] : memref<16x32xbf16, #tpu.memory_space<vmem>>, vector<16x32xbf16>
    %c0_4 = arith.constant 0 : index
    %c0_5 = arith.constant 0 : index
    %5 = vector.load %arg4[%c0_4, %c0_5] : memref<32x96xbf16, #tpu.memory_space<vmem>>, vector<32x96xbf16>
    %cst = arith.constant dense<0.000000e+00> : vector<16x96xf32>
    %6 = tpu.matmul %4, %5, %cst {dimension_numbers = #tpu.dot_dimension_numbers<[1], [0], [0], [1], [0, 0, 1, 1], [], []>} : vector<16x32xbf16>, vector<32x96xbf16>, vector<16x96xf32> -> vector<16x96xf32>
    %7 = arith.addf %3, %6 : vector<16x96xf32>
    %c0_6 = arith.constant 0 : index
    %c0_7 = arith.constant 0 : index
    %8 = vector.load %arg7[%c0_6, %c0_7] : memref<16x96xf32, #tpu.memory_space<vmem>>, vector<16x96xf32>
    tpu.vector_store %arg7[%c0_6, %c0_7], %7 {strides = array<i32>} : memref<16x96xf32, #tpu.memory_space<vmem>>, vector<16x96xf32>,
    %c0_i32_8 = arith.constant 0 : i32
    %9 = arith.cmpi eq, %arg2, %c0_i32_8 : i32
    %10 = arith.extui %9 : i1 to i32
    %c0_i32_9 = arith.constant 0 : i32
    %11 = arith.cmpi ne, %10, %c0_i32_9 : i32
    scf.if %11 {
      %c0_10 = arith.constant 0 : index
      %c0_11 = arith.constant 0 : index
      %12 = vector.load %arg7[%c0_10, %c0_11] : memref<16x96xf32, #tpu.memory_space<vmem>>, vector<16x96xf32>
      %c0_12 = arith.constant 0 : index
      %c0_13 = arith.constant 0 : index
      %13 = vector.load %arg5[%c0_12, %c0_13] : memref<1x96xf32, #tpu.memory_space<vmem>>, vector<1x96xf32>
      %14 = vector.broadcast %13 : vector<1x96xf32> to vector<16x96xf32>
      %15 = arith.addf %12, %14 : vector<16x96xf32>
      %16 = arith.truncf %15 : vector<16x96xf32> to vector<16x96xbf16>
      %c0_14 = arith.constant 0 : index
      %c0_15 = arith.constant 0 : index
      %17 = vector.load %arg6[%c0_14, %c0_15] : memref<16x96xbf16, #tpu.memory_space<vmem>>, vector<16x96xbf16>
      tpu.vector_store %arg6[%c0_14, %c0_15], %16 {strides = array<i32>} : memref<16x96xbf16, #tpu.memory_space<vmem>>, vector<16x96xbf16>,
    } else {
    }
    return
  }
  func.func @transform_0(%arg0: i32, %arg1: i32, %arg2: i32) -> (i32, i32) {
    %c0_i32 = arith.constant 0 : i32
    return %arg0, %arg2 : i32, i32
  }
  func.func @transform_1(%arg0: i32, %arg1: i32, %arg2: i32) -> (i32, i32) {
    %c0_i32 = arith.constant 0 : i32
    return %arg2, %arg1 : i32, i32
  }
  func.func @transform_2(%arg0: i32, %arg1: i32, %arg2: i32) -> (i32, i32) {
    %c0_i32 = arith.constant 0 : i32
    %c0_i32_0 = arith.constant 0 : i32
    return %c0_i32, %arg1 : i32, i32
  }
  func.func @transform_3(%arg0: i32, %arg1: i32, %arg2: i32) -> (i32, i32) {
    %c0_i32 = arith.constant 0 : i32
    return %arg0, %arg1 : i32, i32
  }
}

</mosaic_0001>

<bundles_post_ra>
// kernel: tpu_custom_call.1
= control target key start
LH: loop header
LB: loop body
LE: loop exit
PB: predicated region body
PF: predicated region fallthrough
CT: control target
= control target key end

     0   :  { %8 = vsyncpa [#allocation4], 0  ;;  %s317_s0 = inlined_call_operand.hbm [shape: bf16[16,32], index: 0, kind: input, shape index: {}]   ;;  %s318_s1 = inlined_call_operand.hbm [shape: bf16[32,96], index: 1, kind: input, shape index: {}]   ;;  %s319_s2 = inlined_call_operand.vmem [shape: f32[1,96], index: 2, kind: input, shape index: {}]   ;;  %s320_s3 = inlined_call_operand.hbm [shape: bf16[16,96], index: 3, kind: output, shape index: {}]  }
   0x1   :  { %9 = vsyncpa [#allocation7], 0 }
   0x2   :  { %10 = vsyncpa [#allocation5], 0  ;;  %s265_s12 = smov [#allocation3]  }
   0x3   :  { %s16_s13 = sshll.u32 %s265_s12, 4  ;;  %s17_s13 = int_to_ptr.vmem [resolvable:$true] %s16_s13 }
   0x4   :  { %s207_s14 = scalar_lea.vmem %s17_s13, 128  ;;  %p212_p1 = scmp.lt.s32.totalorder %s17_s13, %s17_s13 }
   0x5   :  { %p208_p0 = scmp.ne.s32.totalorder %s17_s13, %s207_s14  ;;  %p213_p2 = scmp.lt.s32.totalorder %s207_s14, %s207_s14 }
   0x7   :  { %p214_p3 = por %p213_p2, %p212_p1 }
   0x9   :  { %p215_p4 = pnand %p214_p3, %p208_p0 }
   0xb   :  { %218 = shalt.err (!%p215_p4)
}
   0xc   :  { %s266_s15 = smov 64   ;;  %s267_s16 = smov 4  }
   0xd   :  { %22 = dma.hbm_to_vmem [thread:$0]  %s317_s0, 128, %s17_s13, [#allocation4], %s266_s15, %s266_s15, %s267_s16  }
   0xe   :  { %s268_s19 = smov [#allocation6]  }
   0xf   :  { %s28_s20 = sshll.u32 %s268_s19, 4  ;;  %s29_s20 = int_to_ptr.vmem [resolvable:$true] %s28_s20 }
  0x10   :  { %s227_s21 = scalar_lea.vmem %s29_s20, 256  ;;  %p232_p6 = scmp.lt.s32.totalorder %s29_s20, %s29_s20 }
  0x11   :  { %p228_p5 = scmp.ne.s32.totalorder %s29_s20, %s227_s21  ;;  %p233_p7 = scmp.lt.s32.totalorder %s227_s21, %s227_s21 }
  0x13   :  { %p234_p8 = por %p233_p7, %p232_p6 }
  0x15   :  { %p235_p9 = pnand %p234_p8, %p228_p5 }
  0x17   :  { %238 = shalt.err (!%p235_p9)
}
  0x18   :  { %34 = dma.hbm_to_vmem [thread:$0]  %s318_s1, 256, %s29_s20, [#allocation7], %s266_s15, %s266_s15, %s267_s16  }
  0x19   :  { %259 = dma.done.wait [#allocation4], 128  }
  0x1a   :  { %260 = vsyncadd [#allocation4], 4294967168 }
  0x1b   :  { %261 = dma.done.wait [#allocation7], 256  }
  0x1c   :  { %262 = vsyncadd [#allocation7], 4294967040  ;;  %vm48_vm0 = vcmask 785408   ;;  %v269_v0 = vmov 0.0   ;;  %vm270_vm1 = vmmov 0   ;;  %v196_v1 = vld [vmem:[#allocation6 + $0x8] sm:$0xff]  }
  0x1d   :  { %49 = vst.msk [vmem:[#allocation2] sm:$0xff] %vm48_vm0, %v269_v0  ;;  %50 = vst.msk [vmem:[#allocation2 + $0x8] sm:$0xff] %vm48_vm0, %v269_v0  ;;  %181 = vmatprep.subr.bf16.mxu0 %v269_v0  ;;  %185 = vmatprep.mubr.msk.bf16.mxu0 %vm270_vm1, %v269_v0  ;;  %v197_v2 = vld [vmem:[#allocation6] sm:$0xff]   ;;  %v198_v3 = vld [vmem:[#allocation3] sm:$0xff]   ;;  %vm76_vm2 = vcmask 261120   ;;  %vm148_vm3 = vcmask 781312  }
  0x1e   :  { %182 = vmatpush3.bf16.msra.mxu0 %v196_v1  ;;  %v173_v12 = vld [vmem:[%s319_s2] ss:$0 sm:$0xff]  ;;  %s271_s24 = smov [#allocation8]  }
  0x1f   :  { %183 = vmatprep.subr.bf16.mxu0 %v269_v0  ;;  %s156_s25 = sshll.u32 %s271_s24, 4  ;;  %s157_s25 = int_to_ptr.vmem [resolvable:$true] %s156_s25 }
  0x20   :  { %s239_s26 = scalar_lea.vmem %s157_s25, 128  ;;  %p244_p11 = scmp.lt.s32.totalorder %s157_s25, %s157_s25 }
  0x21   :  { %p240_p10 = scmp.ne.s32.totalorder %s157_s25, %s239_s26  ;;  %p245_p12 = scmp.lt.s32.totalorder %s239_s26, %s239_s26 }
  0x22   :  { %184 = vmatpush3.bf16.msra.mxu0 %v197_v2 }
  0x23   :  { %p246_p13 = por %p245_p12, %p244_p11 }
  0x24   :  { %v51_v4 = vld [vmem:[#allocation2] sm:$0xff]  ;;  %v52_v8 = vld [vmem:[#allocation2 + $0x8] sm:$0xff] }
  0x25   :  { %186 = vmatmul.mubr.msk.bf16.vlgmr.msra.gmra.mxu0 %vm76_vm2, %v198_v3  ;;  %p247_p0 = pnand %p246_p13, %p240_p10 }
  0xe5   :  { %v114_v5 = vpop.f32.mrf.mxu0 }
  0xe6   :  { %v121_v6 = vadd.f32 %v114_v5, %v51_v4 }
  0xe7   :  { %v187_v7 = vpop.f32.mrf.mxu0 }
  0xe8   :  { %124 = vst.msk [vmem:[#allocation2] sm:$0xff] %vm48_vm0, %v121_v6 }
  0xe9   :  { %v117_v9 = vpop.f32.mrf.mxu0 }
  0xea   :  { %v122_v10 = vadd.f32 %v117_v9, %v52_v8 }
  0xeb   :  { %v188_v11 = vpop.f32.mrf.mxu0 }
  0xec   :  { %125 = vst.msk [vmem:[#allocation2 + $0x8] sm:$0xff] %vm48_vm0, %v122_v10 }
  0xef   :  { %v129_v13 = vld [vmem:[#allocation2] sm:$0xff] }
  0xf0   :  { %v138_v14 = vadd.f32 %v173_v12, %v129_v13 }
  0xf2   :  { %v176_v15 = vpack.c.bf16 %v138_v14, %v138_v14 }
  0xf3   :  { %v130_v16 = vld [vmem:[#allocation2 + $0x8] sm:$0xff] }
  0xf4   :  { %v139_v17 = vadd.f32 %v173_v12, %v130_v16  ;;  %149 = vst.msk [vmem:[#allocation8] sm:$0xf] %vm148_vm3, %v176_v15 }
  0xf6   :  { %v177_v18 = vpack.c.bf16 %v139_v17, %v139_v17 }
  0xf8   :  { %150 = vst.msk [vmem:[#allocation8 + $0x4] sm:$0xf] %vm148_vm3, %v177_v18 }
  0xf9   :  { %250 = shalt.err (!%p247_p0)
}
  0xfa   :  { %162 = dma.vmem_to_hbm [thread:$0]  %s157_s25, 128, %s320_s3, [#allocation5], %s266_s15, %s266_s15, %s267_s16  }
  0xfb   :  { %263 = dma.done.wait [#allocation5], 128  }
  0xfc   :  { %264 = vsyncadd [#allocation5], 4294967168 }
  0xfd   :  { %166 = vsyncpa [#allocation4], 1 }
  0xfe   :  { %167 = vsyncpa [#allocation7], 1 }
  0xff   :  { %168 = vsyncpa [#allocation5], 1 }

</bundles_post_ra>
